<compile_context>
chip_gen: v6e
topology: v6e:2x2x1
jax: 0.10.0
libtpu: 0.0.40
codegen_flags: <defaults>
</compile_context>

<pallas_src>
import jax
import jax.numpy as jnp
import numpy as np
from jax.experimental import pallas as pl
from jax.experimental.pallas import tpu as pltpu


# -----------------------------------------------------------------------------
# Kernel: one batch-chunk (CB graphs) per grid point, all operands VMEM-resident.
# -----------------------------------------------------------------------------
def msgc_kernel(x_ref, abig_ref, wc_ref, bc_ref, vec_ref, o_ref):
    """
    x_ref:    (CB*N, C)          node features of CB graphs, row-stacked
    abig_ref: (3, CB*N, CB*N)    block-diagonal I_CB (x) [A, A^2, A^4]
    wc_ref:   (3, C, D)          collapsed weights  W_k^k @ wp_k
    bc_ref:   (CB*N, D)          collapsed bias (conv bias chains + proj bias), tiled
    vec_ref:  (2, D)             rows: LN gamma, LN beta
    o_ref:    (CB*N, D)
    """
    X = x_ref[...]
    h = bc_ref[...]
    for k in range(3):  # static unroll over the three scales
        g = jnp.dot(X, wc_ref[k], preferred_element_type=jnp.float32)        # (CB*N, D)
        h = h + jnp.dot(abig_ref[k], g, preferred_element_type=jnp.float32)  # (CB*N, D)

    # LayerNorm (biased variance, eps=1e-5) + exact erf-GELU, all f32.
    mean = jnp.mean(h, axis=-1, keepdims=True)
    var = jnp.mean((h - mean) ** 2, axis=-1, keepdims=True)
    hn = (h - mean) * jax.lax.rsqrt(var + 1e-5)
    hn = hn * vec_ref[0:1, :] + vec_ref[1:2, :]
    o_ref[...] = 0.5 * hn * (1.0 + jax.lax.erf(hn * (1.0 / jnp.sqrt(2.0))))


# -----------------------------------------------------------------------------
# Glue: normalized adjacency + algebraic collapse (jittable, hoistable when the
# graph / parameters are static across time-steps).
# -----------------------------------------------------------------------------
def _normalized_adjacency(edge_index, edge_attr, num_nodes):
    src = edge_index[0]
    tgt = edge_index[1]
    if edge_attr is not None:
        w = edge_attr.reshape(-1).astype(jnp.float32)
    else:
        w = jnp.ones((edge_index.shape[1],), jnp.float32)
    A = jnp.zeros((num_nodes, num_nodes), jnp.float32).at[tgt, src].add(w)
    A = A + jnp.eye(num_nodes, dtype=jnp.float32)          # self loops, weight 1
    deg = A.sum(axis=1)
    dinv = jax.lax.rsqrt(deg)
    return dinv[:, None] * A * dinv[None, :]


def prepare_msgc_operands(edge_index, edge_attr, params, num_nodes):
    """Builds the packed operand slabs consumed by the Pallas kernel."""
    N = num_nodes
    A = _normalized_adjacency(edge_index, edge_attr, N)
    A2 = A @ A
    A4 = A2 @ A2

    W1, W2, W3 = params["w1"], params["w2"], params["w3"]
    b1, b2, b3 = params["b1"], params["b2"], params["b3"]
    P = W1.shape[1]
    wp = params["wp"].astype(jnp.float32)
    wp1, wp2, wp3 = wp[0:P], wp[P:2 * P], wp[2 * P:3 * P]

    W2_eff = W2 @ W2
    W3_sq = W3 @ W3
    W3_eff = W3_sq @ W3_sq

    # g^k(X) = A^k X W^k + C_k,   C_1 = 1b,  C_{k+1} = A C_k W + 1b
    B1 = jnp.broadcast_to(b1[None, :], (N, P))
    B2 = A @ jnp.broadcast_to(b2[None, :], (N, P)) @ W2 + b2[None, :]
    B4 = jnp.broadcast_to(b3[None, :], (N, P))
    for _ in range(3):
        B4 = A @ B4 @ W3 + b3[None, :]

    # Fold the projection into the per-scale weights / bias.
    A_stack = jnp.stack([A, A2, A4]).astype(jnp.float32)
    Wc_stack = jnp.stack([W1 @ wp1, W2_eff @ wp2, W3_eff @ wp3]).astype(jnp.float32)
    Bc_node = (B1 @ wp1 + B2 @ wp2 + B4 @ wp3 + params["bp"][None, :]).astype(jnp.float32)
    vec = jnp.stack([params["gamma"], params["beta"]]).astype(jnp.float32)
    return A_stack, Wc_stack, Bc_node, vec


@jax.jit
def msgc_apply(x_batched, operands):
    """x_batched: (B, N, C) graphs/time-steps sharing one adjacency -> (B, N, D)."""
    A_stack, Wc_stack, Bc_node, vec = operands
    B, N, C = x_batched.shape
    D = Wc_stack.shape[2]

    # Chunk size: keep the block-diagonal adjacency around (<=128)x(<=128) so it
    # feeds the MXU well while staying tiny in VMEM.
    CB = max(1, min(B, 128 // max(1, N)))
    n_chunks = -(-B // CB)
    Bp = n_chunks * CB
    M = CB * N

    x = x_batched.astype(jnp.float32)
    if Bp != B:
        x = jnp.pad(x, ((0, Bp - B), (0, 0), (0, 0)))
    x_flat = x.reshape(Bp * N, C)

    # Block-diagonal adjacency powers: Abig[k] = I_CB (x) A^k   (layout plumbing
    # done once in the wrapper; numerically identical to per-graph matmuls).
    eye = jnp.eye(CB, dtype=jnp.float32)
    Abig = (eye[None, :, None, :, None] * A_stack[:, None, :, None, :]).reshape(3, M, M)
    Bc = jnp.tile(Bc_node, (CB, 1))                          # (CB*N, D)

    out = pl.pallas_call(
        msgc_kernel,
        out_shape=jax.ShapeDtypeStruct((Bp * N, D), jnp.float32),
        grid=(n_chunks,),
        in_specs=[
            pl.BlockSpec((M, C), lambda i: (i, 0)),
            pl.BlockSpec((3, M, M), lambda i: (0, 0, 0)),   # resident across grid
            pl.BlockSpec((3, C, D), lambda i: (0, 0, 0)),
            pl.BlockSpec((M, D), lambda i: (0, 0)),
            pl.BlockSpec((2, D), lambda i: (0, 0)),
        ],
        out_specs=pl.BlockSpec((M, D), lambda i: (i, 0)),
        compiler_params=pltpu.CompilerParams(
            dimension_semantics=("parallel",)),   # chunks shard across TCs
    )(x_flat, Abig, Wc_stack, Bc, vec)
    return out.reshape(Bp, N, D)[:B]


@jax.jit
def multi_scale_graph_conv(x, edge_index, edge_attr, params):
    """Module-equivalent forward: x (N, in_dim) -> (N, out_dim)."""
    N = x.shape[0]
    operands = prepare_msgc_operands(edge_index, edge_attr, params, N)
    return msgc_apply(x[None], operands)[0]


# -----------------------------------------------------------------------------
# Pure-JAX reference (sequential formulation, matches the PyTorch module).
# -----------------------------------------------------------------------------
def reference_forward(x, edge_index, edge_attr, params):
    N = x.shape[0]
    A = _normalized_adjacency(edge_index, edge_attr, N)

    def gcn(h, W, b):
        return A @ (h @ W) + b[None, :]

    f1 = gcn(x, params["w1"], params["b1"])
    f2 = x
    for _ in range(2):
        f2 = gcn(f2, params["w2"], params["b2"])
    f3 = x
    for _ in range(4):
        f3 = gcn(f3, params["w3"], params["b3"])
    z = jnp.concatenate([f1, f2, f3], axis=1)
    h = z @ params["wp"] + params["bp"][None, :]
    mean = jnp.mean(h, axis=-1, keepdims=True)
    var = jnp.mean((h - mean) ** 2, axis=-1, keepdims=True)
    hn = (h - mean) * jax.lax.rsqrt(var + 1e-5)
    hn = hn * params["gamma"][None, :] + params["beta"][None, :]
    return 0.5 * hn * (1.0 + jax.lax.erf(hn * (1.0 / jnp.sqrt(2.0))))


def init_params(key, in_dim, out_dim, scales=(1, 2, 4)):
    per = out_dim // len(scales)
    assert per == in_dim, "repeated conv application requires in_dim == out_dim // len(scales)"
    ks = jax.random.split(key, 8)
    s = 0.1
    return {
        "w1": s * jax.random.normal(ks[0], (in_dim, per), jnp.float32),
        "b1": s * jax.random.normal(ks[1], (per,), jnp.float32),
        "w2": s * jax.random.normal(ks[2], (in_dim, per), jnp.float32),
        "b2": s * jax.random.normal(ks[3], (per,), jnp.float32),
        "w3": s * jax.random.normal(ks[4], (in_dim, per), jnp.float32),
        "b3": s * jax.random.normal(ks[5], (per,), jnp.float32),
        "wp": s * jax.random.normal(ks[6], (out_dim, out_dim), jnp.float32),
        "bp": s * jax.random.normal(ks[7], (out_dim,), jnp.float32),
        "gamma": jnp.ones((out_dim,), jnp.float32),
        "beta": jnp.zeros((out_dim,), jnp.float32),
    }


if __name__ == "__main__":
    N = 16          # graph nodes
    in_dim = 16
    out_dim = 48    # out_dim // 3 == in_dim
    B = 8           # batched time-steps sharing the same graph

    key = jax.random.PRNGKey(0)
    kx, kw, ke, kb = jax.random.split(key, 4)

    x = jax.random.normal(kx, (N, in_dim), jnp.float32)

    # bidirectional ring graph -> edge_index (2, 32), edge_attr (32, 1)
    idx = jnp.arange(N, dtype=jnp.int32)
    src = jnp.concatenate([idx, (idx + 1) % N])
    tgt = jnp.concatenate([(idx + 1) % N, idx])
    edge_index = jnp.stack([src, tgt], axis=0)
    edge_attr = 0.5 + jnp.abs(jax.random.normal(ke, (edge_index.shape[1], 1), jnp.float32))

    params = init_params(kw, in_dim, out_dim)

    # --- module-equivalent single-graph forward (fully jitted) ---
    out = multi_scale_graph_conv(x, edge_index, edge_attr, params)
    jax.block_until_ready(out)
    assert out.shape == (N, out_dim) and out.dtype == jnp.float32

    ref = reference_forward(x, edge_index, edge_attr, params)
    assert np.allclose(np.asarray(out), np.asarray(ref), atol=1e-4, rtol=1e-3)

    # --- batched path: graph prep hoisted once, B time-steps in one pallas_call ---
    prep = jax.jit(prepare_msgc_operands, static_argnames="num_nodes")
    operands = prep(edge_index, edge_attr, params, num_nodes=N)
    xb = jax.random.normal(kb, (B, N, in_dim), jnp.float32)
    out_b = msgc_apply(xb, operands)
    jax.block_until_ready(out_b)
    assert out_b.shape == (B, N, out_dim)
    ref_b = np.stack([np.asarray(reference_forward(xb[b], edge_index, edge_attr, params))
                      for b in range(B)])
    assert np.allclose(np.asarray(out_b), ref_b, atol=1e-4, rtol=1e-3)

    print("KERNEL_OK")
</pallas_src>

<mosaic_0001>
module attributes {stable_mosaic.version = 11 : i64} {
  func.func @msgc_kernel(%arg0: i32, %arg1: memref<16x16xf32, #tpu.memory_space<vmem>>, %arg2: memref<3x16x16xf32, #tpu.memory_space<vmem>>, %arg3: memref<3x16x48xf32, #tpu.memory_space<vmem>>, %arg4: memref<16x48xf32, #tpu.memory_space<vmem>>, %arg5: memref<2x48xf32, #tpu.memory_space<vmem>>, %arg6: memref<16x48xf32, #tpu.memory_space<vmem>>) attributes {dimension_semantics = [#tpu.dimension_semantics<parallel>], iteration_bounds = array<i64: 1>, scalar_prefetch = 0 : i64, scratch_operands = 0 : i64, tpu.core_type = #tpu.core_type<tc>, window_params = [{transform_indices = @transform_0, window_bounds = array<i64: 16, 16>}, {pipeline_mode = #tpu.pipeline_mode<synchronous>, transform_indices = @transform_1, window_bounds = array<i64: 3, 16, 16>}, {pipeline_mode = #tpu.pipeline_mode<synchronous>, transform_indices = @transform_2, window_bounds = array<i64: 3, 16, 48>}, {pipeline_mode = #tpu.pipeline_mode<synchronous>, transform_indices = @transform_3, window_bounds = array<i64: 16, 48>}, {pipeline_mode = #tpu.pipeline_mode<synchronous>, transform_indices = @transform_4, window_bounds = array<i64: 2, 48>}, {transform_indices = @transform_5, window_bounds = array<i64: 16, 48>}]} {
    %c0 = arith.constant 0 : index
    %c0_0 = arith.constant 0 : index
    %0 = vector.load %arg1[%c0, %c0_0] : memref<16x16xf32, #tpu.memory_space<vmem>>, vector<16x16xf32>
    %c0_1 = arith.constant 0 : index
    %c0_2 = arith.constant 0 : index
    %1 = vector.load %arg4[%c0_1, %c0_2] : memref<16x48xf32, #tpu.memory_space<vmem>>, vector<16x48xf32>
    %c0_3 = arith.constant 0 : index
    %c0_4 = arith.constant 0 : index
    %c0_5 = arith.constant 0 : index
    %2 = vector.load %arg3[%c0_3, %c0_4, %c0_5] : memref<3x16x48xf32, #tpu.memory_space<vmem>>, vector<1x16x48xf32>
    %3 = vector.shape_cast %2 : vector<1x16x48xf32> to vector<16x48xf32>
    %cst = arith.constant dense<0.000000e+00> : vector<16x48xf32>
    %4 = tpu.matmul %0, %3, %cst {dimension_numbers = #tpu.dot_dimension_numbers<[1], [0], [0], [1], [0, 0, 1, 1], [], []>} : vector<16x16xf32>, vector<16x48xf32>, vector<16x48xf32> -> vector<16x48xf32>
    %c0_6 = arith.constant 0 : index
    %c0_7 = arith.constant 0 : index
    %c0_8 = arith.constant 0 : index
    %5 = vector.load %arg2[%c0_6, %c0_7, %c0_8] : memref<3x16x16xf32, #tpu.memory_space<vmem>>, vector<1x16x16xf32>
    %6 = vector.shape_cast %5 : vector<1x16x16xf32> to vector<16x16xf32>
    %cst_9 = arith.constant dense<0.000000e+00> : vector<16x48xf32>
    %7 = tpu.matmul %6, %4, %cst_9 {dimension_numbers = #tpu.dot_dimension_numbers<[1], [0], [0], [1], [0, 0, 1, 1], [], []>} : vector<16x16xf32>, vector<16x48xf32>, vector<16x48xf32> -> vector<16x48xf32>
    %8 = arith.addf %1, %7 : vector<16x48xf32>
    %c1 = arith.constant 1 : index
    %c0_10 = arith.constant 0 : index
    %c0_11 = arith.constant 0 : index
    %9 = vector.load %arg3[%c1, %c0_10, %c0_11] : memref<3x16x48xf32, #tpu.memory_space<vmem>>, vector<1x16x48xf32>
    %10 = vector.shape_cast %9 : vector<1x16x48xf32> to vector<16x48xf32>
    %cst_12 = arith.constant dense<0.000000e+00> : vector<16x48xf32>
    %11 = tpu.matmul %0, %10, %cst_12 {dimension_numbers = #tpu.dot_dimension_numbers<[1], [0], [0], [1], [0, 0, 1, 1], [], []>} : vector<16x16xf32>, vector<16x48xf32>, vector<16x48xf32> -> vector<16x48xf32>
    %c1_13 = arith.constant 1 : index
    %c0_14 = arith.constant 0 : index
    %c0_15 = arith.constant 0 : index
    %12 = vector.load %arg2[%c1_13, %c0_14, %c0_15] : memref<3x16x16xf32, #tpu.memory_space<vmem>>, vector<1x16x16xf32>
    %13 = vector.shape_cast %12 : vector<1x16x16xf32> to vector<16x16xf32>
    %cst_16 = arith.constant dense<0.000000e+00> : vector<16x48xf32>
    %14 = tpu.matmul %13, %11, %cst_16 {dimension_numbers = #tpu.dot_dimension_numbers<[1], [0], [0], [1], [0, 0, 1, 1], [], []>} : vector<16x16xf32>, vector<16x48xf32>, vector<16x48xf32> -> vector<16x48xf32>
    %15 = arith.addf %8, %14 : vector<16x48xf32>
    %c2 = arith.constant 2 : index
    %c0_17 = arith.constant 0 : index
    %c0_18 = arith.constant 0 : index
    %16 = vector.load %arg3[%c2, %c0_17, %c0_18] : memref<3x16x48xf32, #tpu.memory_space<vmem>>, vector<1x16x48xf32>
    %17 = vector.shape_cast %16 : vector<1x16x48xf32> to vector<16x48xf32>
    %cst_19 = arith.constant dense<0.000000e+00> : vector<16x48xf32>
    %18 = tpu.matmul %0, %17, %cst_19 {dimension_numbers = #tpu.dot_dimension_numbers<[1], [0], [0], [1], [0, 0, 1, 1], [], []>} : vector<16x16xf32>, vector<16x48xf32>, vector<16x48xf32> -> vector<16x48xf32>
    %c2_20 = arith.constant 2 : index
    %c0_21 = arith.constant 0 : index
    %c0_22 = arith.constant 0 : index
    %19 = vector.load %arg2[%c2_20, %c0_21, %c0_22] : memref<3x16x16xf32, #tpu.memory_space<vmem>>, vector<1x16x16xf32>
    %20 = vector.shape_cast %19 : vector<1x16x16xf32> to vector<16x16xf32>
    %cst_23 = arith.constant dense<0.000000e+00> : vector<16x48xf32>
    %21 = tpu.matmul %20, %18, %cst_23 {dimension_numbers = #tpu.dot_dimension_numbers<[1], [0], [0], [1], [0, 0, 1, 1], [], []>} : vector<16x16xf32>, vector<16x48xf32>, vector<16x48xf32> -> vector<16x48xf32>
    %22 = arith.addf %15, %21 : vector<16x48xf32>
    %cst_24 = arith.constant dense<0.000000e+00> : vector<16xf32>
    %23 = vector.multi_reduction <add>, %22, %cst_24 [1] : vector<16x48xf32> to vector<16xf32>
    %24 = vector.shape_cast %23 : vector<16xf32> to vector<16x1xf32>
    %cst_25 = arith.constant 4.800000e+01 : f32
    %25 = vector.broadcast %cst_25 : f32 to vector<16x1xf32>
    %26 = arith.divf %24, %25 : vector<16x1xf32>
    %27 = vector.broadcast %26 : vector<16x1xf32> to vector<16x48xf32>
    %28 = arith.subf %22, %27 : vector<16x48xf32>
    %29 = arith.mulf %28, %28 : vector<16x48xf32>
    %cst_26 = arith.constant dense<0.000000e+00> : vector<16xf32>
    %30 = vector.multi_reduction <add>, %29, %cst_26 [1] : vector<16x48xf32> to vector<16xf32>
    %31 = vector.shape_cast %30 : vector<16xf32> to vector<16x1xf32>
    %cst_27 = arith.constant 4.800000e+01 : f32
    %32 = vector.broadcast %cst_27 : f32 to vector<16x1xf32>
    %33 = arith.divf %31, %32 : vector<16x1xf32>
    %34 = vector.broadcast %26 : vector<16x1xf32> to vector<16x48xf32>
    %35 = arith.subf %22, %34 : vector<16x48xf32>
    %cst_28 = arith.constant 9.99999974E-6 : f32
    %36 = vector.broadcast %cst_28 : f32 to vector<16x1xf32>
    %37 = arith.addf %33, %36 : vector<16x1xf32>
    %38 = math.rsqrt %37 : vector<16x1xf32>
    %39 = vector.broadcast %38 : vector<16x1xf32> to vector<16x48xf32>
    %40 = arith.mulf %35, %39 : vector<16x48xf32>
    %c0_29 = arith.constant 0 : index
    %c0_30 = arith.constant 0 : index
    %41 = vector.load %arg5[%c0_29, %c0_30] : memref<2x48xf32, #tpu.memory_space<vmem>>, vector<1x48xf32>
    %42 = vector.broadcast %41 : vector<1x48xf32> to vector<16x48xf32>
    %43 = arith.mulf %40, %42 : vector<16x48xf32>
    %c1_31 = arith.constant 1 : index
    %c0_32 = arith.constant 0 : index
    %44 = vector.load %arg5[%c1_31, %c0_32] : memref<2x48xf32, #tpu.memory_space<vmem>>, vector<1x48xf32>
    %45 = vector.broadcast %44 : vector<1x48xf32> to vector<16x48xf32>
    %46 = arith.addf %43, %45 : vector<16x48xf32>
    %cst_33 = arith.constant 5.000000e-01 : f32
    %47 = vector.broadcast %cst_33 : f32 to vector<16x48xf32>
    %48 = arith.mulf %47, %46 : vector<16x48xf32>
    %cst_34 = arith.constant 2.000000e+00 : f32
    %49 = math.sqrt %cst_34 : f32
    %cst_35 = arith.constant 1.000000e+00 : f32
    %50 = arith.divf %cst_35, %49 : f32
    %51 = vector.broadcast %50 : f32 to vector<16x48xf32>
    %52 = arith.mulf %46, %51 : vector<16x48xf32>
    %53 = math.erf %52 : vector<16x48xf32>
    %cst_36 = arith.constant 1.000000e+00 : f32
    %54 = vector.broadcast %cst_36 : f32 to vector<16x48xf32>
    %55 = arith.addf %54, %53 : vector<16x48xf32>
    %56 = arith.mulf %48, %55 : vector<16x48xf32>
    %c0_37 = arith.constant 0 : index
    %c0_38 = arith.constant 0 : index
    %57 = vector.load %arg6[%c0_37, %c0_38] : memref<16x48xf32, #tpu.memory_space<vmem>>, vector<16x48xf32>
    tpu.vector_store %arg6[%c0_37, %c0_38], %56 {strides = array<i32>} : memref<16x48xf32, #tpu.memory_space<vmem>>, vector<16x48xf32>,
    return
  }
  func.func @transform_0(%arg0: i32) -> (i32, i32) {
    %c0_i32 = arith.constant 0 : i32
    %c0_i32_0 = arith.constant 0 : i32
    return %arg0, %c0_i32 : i32, i32
  }
  func.func @transform_1(%arg0: i32) -> (i32, i32, i32) {
    %c0_i32 = arith.constant 0 : i32
    %c0_i32_0 = arith.constant 0 : i32
    %c0_i32_1 = arith.constant 0 : i32
    %c0_i32_2 = arith.constant 0 : i32
    return %c0_i32, %c0_i32_0, %c0_i32_1 : i32, i32, i32
  }
  func.func @transform_2(%arg0: i32) -> (i32, i32, i32) {
    %c0_i32 = arith.constant 0 : i32
    %c0_i32_0 = arith.constant 0 : i32
    %c0_i32_1 = arith.constant 0 : i32
    %c0_i32_2 = arith.constant 0 : i32
    return %c0_i32, %c0_i32_0, %c0_i32_1 : i32, i32, i32
  }
  func.func @transform_3(%arg0: i32) -> (i32, i32) {
    %c0_i32 = arith.constant 0 : i32
    %c0_i32_0 = arith.constant 0 : i32
    %c0_i32_1 = arith.constant 0 : i32
    return %c0_i32, %c0_i32_0 : i32, i32
  }
  func.func @transform_4(%arg0: i32) -> (i32, i32) {
    %c0_i32 = arith.constant 0 : i32
    %c0_i32_0 = arith.constant 0 : i32
    %c0_i32_1 = arith.constant 0 : i32
    return %c0_i32, %c0_i32_0 : i32, i32
  }
  func.func @transform_5(%arg0: i32) -> (i32, i32) {
    %c0_i32 = arith.constant 0 : i32
    %c0_i32_0 = arith.constant 0 : i32
    return %arg0, %c0_i32 : i32, i32
  }
}

</mosaic_0001>

<bundles_post_ra>
// kernel: msgc_apply.1
= control target key start
LH: loop header
LB: loop body
LE: loop exit
PB: predicated region body
PF: predicated region fallthrough
CT: control target
= control target key end

     0   :  { %10 = vsyncpa [#allocation3], 0  ;;  %s944_s0 = inlined_call_operand.hbm [shape: f32[16,16], index: 0, kind: input, shape index: {}]   ;;  %s945_s1 = inlined_call_operand.hbm [shape: f32[3,16,16], index: 1, kind: input, shape index: {}]   ;;  %s946_s2 = inlined_call_operand.hbm [shape: f32[3,16,48], index: 2, kind: input, shape index: {}]   ;;  %s947_s3 = inlined_call_operand.hbm [shape: f32[16,48], index: 3, kind: input, shape index: {}]   ;;  %s948_s4 = inlined_call_operand.vmem [shape: f32[2,48], index: 4, kind: input, shape index: {}]   ;;  %s949_s5 = inlined_call_operand.hbm [shape: f32[16,48], index: 5, kind: output, shape index: {}]  }
   0x1   :  { %11 = vsyncpa [#allocation6], 0 }
   0x2   :  { %12 = vsyncpa [#allocation9], 0 }
   0x3   :  { %13 = vsyncpa [#allocation4], 0  ;;  %s853_s18 = smov [#allocation5]   ;;  %s854_s20 = smov [#allocation2]  }
   0x4   :  { %s31_s19 = sshll.u32 %s853_s18, 4  ;;  %s19_s21 = sshll.u32 %s854_s20, 4  ;;  %s32_s19 = int_to_ptr.vmem [resolvable:$true] %s31_s19  ;;  %s20_s21 = int_to_ptr.vmem [resolvable:$true] %s19_s21 }
   0x5   :  { %s753_s22 = scalar_lea.vmem %s32_s19, 768  ;;  %p758_p1 = scmp.lt.s32.totalorder %s32_s19, %s32_s19 }
   0x6   :  { %p754_p0 = scmp.ne.s32.totalorder %s32_s19, %s753_s22  ;;  %p759_p2 = scmp.lt.s32.totalorder %s753_s22, %s753_s22 }
   0x8   :  { %p760_p3 = por %p759_p2, %p758_p1 }
   0xa   :  { %p761_p4 = pnand %p760_p3, %p754_p0 }
   0xc   :  { %764 = shalt.err (!%p761_p4)
}
   0xd   :  { %s855_s23 = smov 128   ;;  %s856_s24 = smov 8  }
   0xe   :  { %37 = dma.hbm_to_vmem [thread:$0]  %s945_s1, 768, %s32_s19, [#allocation6], %s855_s23, %s855_s23, %s856_s24  }
   0xf   :  { %s773_s27 = scalar_lea.vmem %s20_s21, 256  ;;  %p778_p6 = scmp.lt.s32.totalorder %s20_s21, %s20_s21 }
  0x10   :  { %p774_p5 = scmp.ne.s32.totalorder %s20_s21, %s773_s27  ;;  %p779_p7 = scmp.lt.s32.totalorder %s773_s27, %s773_s27 }
  0x12   :  { %p780_p8 = por %p779_p7, %p778_p6 }
  0x14   :  { %p781_p9 = pnand %p780_p8, %p774_p5 }
  0x16   :  { %784 = shalt.err (!%p781_p9)
}
  0x17   :  { %25 = dma.hbm_to_vmem [thread:$0]  %s944_s0, 256, %s20_s21, [#allocation3], %s855_s23, %s855_s23, %s856_s24  }
  0x18   :  { %s857_s30 = smov [#allocation7]   ;;  %s858_s7 = smov [#allocation8]  }
  0x19   :  { %s43_s6 = sshll.u32 %s857_s30, 4  ;;  %s55_s8 = sshll.u32 %s858_s7, 4  ;;  %s44_s6 = int_to_ptr.vmem [resolvable:$true] %s43_s6  ;;  %s56_s8 = int_to_ptr.vmem [resolvable:$true] %s55_s8 }
  0x1a   :  { %s793_s1 = scalar_lea.vmem %s44_s6, 768  ;;  %p798_p11 = scmp.lt.s32.totalorder %s44_s6, %s44_s6 }
  0x1b   :  { %p794_p10 = scmp.ne.s32.totalorder %s44_s6, %s793_s1  ;;  %p799_p12 = scmp.lt.s32.totalorder %s793_s1, %s793_s1 }
  0x1d   :  { %p800_p13 = por %p799_p12, %p798_p11 }
  0x1f   :  { %p801_p0 = pnand %p800_p13, %p794_p10 }
  0x21   :  { %804 = shalt.err (!%p801_p0)
}
  0x22   :  { %49 = dma.hbm_to_vmem [thread:$0]  %s946_s2, 768, %s44_s6, [#allocation6], %s855_s23, %s855_s23, %s856_s24  }
  0x23   :  { %s813_s0 = scalar_lea.vmem %s56_s8, 256  ;;  %p818_p2 = scmp.lt.s32.totalorder %s56_s8, %s56_s8 }
  0x24   :  { %p814_p1 = scmp.ne.s32.totalorder %s56_s8, %s813_s0  ;;  %p819_p3 = scmp.lt.s32.totalorder %s813_s0, %s813_s0 }
  0x26   :  { %p820_p4 = por %p819_p3, %p818_p2 }
  0x28   :  { %p821_p5 = pnand %p820_p4, %p814_p1 }
  0x2a   :  { %824 = shalt.err (!%p821_p5)
}
  0x2b   :  { %61 = dma.hbm_to_vmem [thread:$0]  %s947_s3, 256, %s56_s8, [#allocation9], %s855_s23, %s855_s23, %s856_s24  }
  0x2c   :  { %845 = dma.done.wait [#allocation3], 256  }
  0x2d   :  { %846 = vsyncadd [#allocation3], 4294967040 }
  0x2e   :  { %847 = dma.done.wait [#allocation6], 1536  }
  0x2f   :  { %848 = vsyncadd [#allocation6], 4294965760 }
  0x30   :  { %849 = dma.done.wait [#allocation9], 256  }
  0x31   :  { %850 = vsyncadd [#allocation9], 4294967040  ;;  %vm82_vm0 = vcmask 130048   ;;  %v81_v0 = vld [vmem:[#allocation7 + $0x8] sm:$0xff]  ;;  %v80_v1 = vld [vmem:[#allocation7] sm:$0xff]  ;;  %vm577_vm1 = vcmask 392192  }
  0x32   :  { %v76_v2 = vld [vmem:[#allocation2] sm:$0xff]  ;;  %688 = vmatprep.subr.mxu0 %v81_v0  ;;  %v77_v3 = vld [vmem:[#allocation2 + $0x8] sm:$0xff]  ;;  %v251_v4 = vld [vmem:[#allocation7 + $0x18] sm:$0xff]  ;;  %s859_s15 = smov [#allocation10]  }
  0x33   :  { %692 = vmatprep.mubr.msk.f32.mxu0 %vm82_vm0, %v76_v2  ;;  %689 = vmatpush3.msra.mxu0 %v81_v0  ;;  %v250_v5 = vld [vmem:[#allocation7 + $0x10] sm:$0xff]  ;;  %v415_v6 = vld [vmem:[#allocation7 + $0x28] sm:$0xff]  ;;  %v414_v7 = vld [vmem:[#allocation7 + $0x20] sm:$0xff]  ;;  %s636_s16 = sshll.u32 %s859_s15, 4  ;;  %s637_s16 = int_to_ptr.vmem [resolvable:$true] %s636_s16 }
  0x34   :  { %690 = vmatprep.subr.mxu0 %v80_v1  ;;  %v164_v8 = vld [vmem:[#allocation5] sm:$0xff]  ;;  %v165_v11 = vld [vmem:[#allocation5 + $0x8] sm:$0xff]  ;;  %v328_v12 = vld [vmem:[#allocation5 + $0x10] sm:$0xff]  ;;  %p830_p7 = scmp.lt.s32.totalorder %s637_s16, %s637_s16 }
  0x35   :  { %691 = vmatpush3.msra.mxu0 %v80_v1  ;;  %699 = vmatprep.mubr.msk.f32.mxu1 %vm82_vm0, %v164_v8  ;;  %v329_v15 = vld [vmem:[#allocation5 + $0x18] sm:$0xff]  ;;  %v492_v16 = vld [vmem:[#allocation5 + $0x20] sm:$0xff]  ;;  %v493_v19 = vld [vmem:[#allocation5 + $0x28] sm:$0xff] }
  0x36   :  { %693 = vmatmul.mubr.msk.f32.vlgmr.msra.gmra.mxu0 %vm82_vm0, %v77_v3  ;;  %702 = vmatprep.subr.mxu0 %v251_v4  ;;  %v78_v22 = vld [vmem:[#allocation8] sm:$0xff]  ;;  %v79_v24 = vld [vmem:[#allocation8 + $0x8] sm:$0xff]  ;;  %v662_v53 = vld [vmem:[%s948_s4] ss:$0 sm:$0xff] }
  0x37   :  { %703 = vmatpush3.msra.mxu0 %v251_v4  ;;  %706 = vmatprep.mubr.msk.f32.mxu0 %vm82_vm0, %v76_v2  ;;  %v663_v55 = vld [vmem:[%s948_s4 + $0x1] ss:$0 sm:$0xff]  ;;  %s825_s4 = scalar_lea.vmem %s637_s16, 256 }
  0x38   :  { %704 = vmatprep.subr.mxu0 %v250_v5  ;;  %p826_p6 = scmp.ne.s32.totalorder %s637_s16, %s825_s4  ;;  %p831_p8 = scmp.lt.s32.totalorder %s825_s4, %s825_s4 }
  0x39   :  { %705 = vmatpush3.msra.mxu0 %v250_v5 }
  0x3a   :  { %707 = vmatmul.mubr.msk.f32.vlgmr.msra.gmra.mxu0 %vm82_vm0, %v77_v3  ;;  %716 = vmatprep.subr.mxu0 %v415_v6  ;;  %p832_p9 = por %p831_p8, %p830_p7 }
  0x3b   :  { %717 = vmatpush3.msra.mxu0 %v415_v6  ;;  %720 = vmatprep.mubr.msk.f32.mxu0 %vm82_vm0, %v76_v2 }
  0x3c   :  { %718 = vmatprep.subr.mxu0 %v414_v7  ;;  %p833_p10 = pnand %p832_p9, %p826_p6 }
  0x3d   :  { %719 = vmatpush3.msra.mxu0 %v414_v7 }
  0x3e   :  { %721 = vmatmul.mubr.msk.f32.vlgmr.msra.gmra.mxu0 %vm82_vm0, %v77_v3 }
  0xf6   :  { %v694_v9 = vpop.f32.mrf.mxu0 }
  0xf7   :  { %695 = vmatprep.subr.mxu1 %v694_v9 }
  0xf8   :  { %v155_v10 = vpop.f32.mrf.mxu0  ;;  %696 = vmatpush3.msra.mxu1 %v694_v9 }
  0xf9   :  { %697 = vmatprep.subr.mxu1 %v155_v10 }
  0xfa   :  { %698 = vmatpush3.msra.mxu1 %v155_v10  ;;  %v708_v13 = vpop.f32.mrf.mxu0 }
  0xfb   :  { %700 = vmatmul.mubr.msk.f32.vlgmr.msra.gmra.mxu1 %vm82_vm0, %v165_v11  ;;  %709 = vmatprep.subr.mxu1 %v708_v13 }
  0xfc   :  { %v318_v14 = vpop.f32.mrf.mxu0  ;;  %710 = vmatpush3.msra.mxu1 %v708_v13  ;;  %713 = vmatprep.mubr.msk.f32.mxu1 %vm82_vm0, %v328_v12 }
  0xfd   :  { %711 = vmatprep.subr.mxu1 %v318_v14 }
  0xfe   :  { %712 = vmatpush3.msra.mxu1 %v318_v14  ;;  %v722_v17 = vpop.f32.mrf.mxu0 }
  0xff   :  { %714 = vmatmul.mubr.msk.f32.vlgmr.msra.gmra.mxu1 %vm82_vm0, %v329_v15  ;;  %723 = vmatprep.subr.mxu1 %v722_v17 }
 0x100   :  { %v482_v18 = vpop.f32.mrf.mxu0  ;;  %724 = vmatpush3.msra.mxu1 %v722_v17  ;;  %727 = vmatprep.mubr.msk.f32.mxu1 %vm82_vm0, %v492_v16 }
 0x101   :  { %725 = vmatprep.subr.mxu1 %v482_v18 }
 0x102   :  { %726 = vmatpush3.msra.mxu1 %v482_v18 }
 0x103   :  { %728 = vmatmul.mubr.msk.f32.vlgmr.msra.gmra.mxu1 %vm82_vm0, %v493_v19 }
 0x1bb   :  { %v701_v20 = vpop.f32.mrf.mxu1 }
 0x1bc   :  { %v248_v28 = vadd.f32 %v701_v20, %v79_v24 }
 0x1bd   :  { %v238_v21 = vpop.f32.mrf.mxu1 }
 0x1be   :  { %v247_v26 = vadd.f32 %v238_v21, %v78_v22 }
 0x1bf   :  { %v715_v23 = vpop.f32.mrf.mxu1 }
 0x1c0   :  { %v412_v31 = vadd.f32 %v715_v23, %v248_v28 }
 0x1c1   :  { %v402_v25 = vpop.f32.mrf.mxu1 }
 0x1c2   :  { %v411_v29 = vadd.f32 %v402_v25, %v247_v26 }
 0x1c3   :  { %v729_v27 = vpop.f32.mrf.mxu1 }
 0x1c4   :  { %v576_v33 = vadd.f32 %v729_v27, %v412_v31 }
 0x1c5   :  { %v566_v30 = vpop.f32.mrf.mxu1 }
 0x1c6   :  { %v575_v32 = vadd.f32 %v566_v30, %v411_v29  ;;  %v581_v35 = vsel %vm577_vm1, %v576_v33, 0.0 }
 0x1c8   :  { %v578_v34 = vsel %vm577_vm1, %v575_v32, 0.0 }
 0x1c9   :  { %579 = vadd.xlane.f32.xlu0 %v578_v34 }
 0x1cd   :  { %582 = vadd.xlane.f32.xlu0 %v581_v35 }
 0x252   :  { %v580_v36 = vpop.xlane.xlu0 %579 }
 0x253   :  { %v585_v37 = vmul.f32 0.020833334, %v580_v36 }
 0x255   :  { %v587_v38 = vsub.f32 %v575_v32, %v585_v37 }
 0x256   :  { %v583_v39 = vpop.xlane.xlu0 %582 }
 0x257   :  { %v586_v40 = vmul.f32 0.020833334, %v583_v39  ;;  %v589_v41 = vmul.f32 %v587_v38, %v587_v38 }
 0x259   :  { %v588_v42 = vsub.f32 %v576_v33, %v586_v40  ;;  %v591_v43 = vsel %vm577_vm1, %v589_v41, 0.0 }
 0x25a   :  { %592 = vadd.xlane.f32.xlu1 %v591_v43 }
 0x25b   :  { %v590_v44 = vmul.f32 %v588_v42, %v588_v42 }
 0x25d   :  { %v594_v45 = vsel %vm577_vm1, %v590_v44, 0.0 }
 0x25e   :  { %595 = vadd.xlane.f32.xlu1 %v594_v45 }
 0x2e3   :  { %v593_v46 = vpop.xlane.xlu1 %592 }
 0x2e4   :  { %v597_v47 = vmul.f32 0.020833334, %v593_v46 }
 0x2e6   :  { %v599_v48 = vadd.f32 1e-05, %v597_v47 }
 0x2e7   :  { %v596_v49 = vpop.xlane.xlu1 %595 }
 0x2e8   :  { %737 = vrsqrt.f32 %v599_v48  ;;  %v598_v50 = vmul.f32 0.020833334, %v596_v49 }
 0x2ea   :  { %v600_v51 = vadd.f32 1e-05, %v598_v50 }
 0x2ec   :  { %739 = vrsqrt.f32 %v600_v51 }
 0x2f5   :  { %v738_v52 = vpop.eup %737 }
 0x2f6   :  { %v603_v54 = vmul.f32 %v738_v52, %v587_v38 }
 0x2f8   :  { %v610_v56 = vmul.f32 %v662_v53, %v603_v54 }
 0x2f9   :  { %v740_v57 = vpop.eup %739 }
 0x2fa   :  { %v604_v58 = vmul.f32 %v740_v57, %v588_v42  ;;  %v617_v59 = vadd.f32 %v663_v55, %v610_v56 }
 0x2fc   :  { %v611_v60 = vmul.f32 %v662_v53, %v604_v58  ;;  %v621_v61 = vmul.f32 0.70710677, %v617_v59  ;;  %v619_v1 = vmul.f32 0.5, %v617_v59 }
 0x2fe   :  { %v618_v62 = vadd.f32 %v663_v55, %v611_v60  ;;  %741 = verf.f32 %v621_v61 }
 0x300   :  { %v622_v63 = vmul.f32 0.70710677, %v618_v62  ;;  %v620_v5 = vmul.f32 0.5, %v618_v62 }
 0x302   :  { %743 = verf.f32 %v622_v63 }
 0x30b   :  { %v742_v0 = vpop.eup %741 }
 0x30c   :  { %v625_v2 = vadd.f32 1.0, %v742_v0 }
 0x30e   :  { %v627_v3 = vmul.f32 %v625_v2, %v619_v1 }
 0x30f   :  { %v744_v4 = vpop.eup %743 }
 0x310   :  { %v626_v6 = vadd.f32 1.0, %v744_v4  ;;  %629 = vst.msk [vmem:[#allocation10] sm:$0xff] %vm577_vm1, %v627_v3 }
 0x312   :  { %v628_v7 = vmul.f32 %v626_v6, %v620_v5 }
 0x314   :  { %630 = vst.msk [vmem:[#allocation10 + $0x8] sm:$0xff] %vm577_vm1, %v628_v7 }
 0x315   :  { %836 = shalt.err (!%p833_p10)
}
 0x316   :  { %642 = dma.vmem_to_hbm [thread:$0]  %s637_s16, 256, %s949_s5, [#allocation4], %s855_s23, %s855_s23, %s856_s24  }
 0x317   :  { %851 = dma.done.wait [#allocation4], 256  }
 0x318   :  { %852 = vsyncadd [#allocation4], 4294967040 }
 0x319   :  { %646 = vsyncpa [#allocation3], 1 }
 0x31a   :  { %647 = vsyncpa [#allocation6], 1 }
 0x31b   :  { %648 = vsyncpa [#allocation9], 1 }
 0x31c   :  { %649 = vsyncpa [#allocation4], 1 }

</bundles_post_ra>
